<compile_context>
chip_gen: v6e
topology: v6e:2x2x1
jax: 0.10.0
libtpu: 0.0.40
codegen_flags: <defaults>
</compile_context>

<pallas_src>
import functools

import jax
import jax.numpy as jnp
from jax.experimental import pallas as pl
from jax.experimental.pallas import tpu as pltpu

ALPHA = 0.5
HUBER_DELTA = 1.0
HUBER_SCALE = 100.0

_LANES = 128
_TARGET_TILE_ROWS = 2048  # 2048 * 128 * 4 B = 1 MiB per f32 input block


def _combined_loss_kernel(yp_ref, yt_ref, out_ref, acc_ref, *,
                          c_mse, c_hub, delta, inv_n):
    i = pl.program_id(0)

    @pl.when(i == 0)
    def _init():
        acc_ref[...] = jnp.zeros_like(acc_ref)

    d = yp_ref[...].astype(jnp.float32) - yt_ref[...].astype(jnp.float32)
    sq = d * d
    ad = jnp.abs(d)
    # HuberLoss(delta): 0.5*d^2 if |d| <= delta else delta*(|d| - 0.5*delta)
    hub = jnp.where(ad <= delta, 0.5 * sq, delta * (ad - 0.5 * delta))
    # Fused per-element combined loss; constants folded at trace time.
    # Padded tail elements have d == 0 -> contribute nothing (no mask needed).
    acc_ref[...] += c_mse * sq + c_hub * hub

    @pl.when(i == pl.num_programs(0) - 1)
    def _finalize():
        out_ref[0, 0] = jnp.sum(acc_ref[...]) * inv_n


def combined_loss(y_pred, y_true, alpha=ALPHA):
    assert y_pred.shape == y_true.shape
    n = y_pred.size
    itemsize = jnp.dtype(y_pred.dtype).itemsize
    sublane = 8 * max(1, 4 // itemsize)  # 8 (f32) / 16 (bf16) / 32 (int8)

    rows = -(-n // _LANES)                       # ceil(n / 128)
    rows = -(-rows // sublane) * sublane         # align to sublane packing
    tile_rows = min(_TARGET_TILE_ROWS, rows)
    total_rows = -(-rows // tile_rows) * tile_rows
    padded = total_rows * _LANES

    yp = y_pred.reshape(-1)
    yt = y_true.reshape(-1)
    if padded != n:
        # Zero-pad both inputs: diff is zero in the tail, so sums are exact.
        yp = jnp.pad(yp, (0, padded - n))
        yt = jnp.pad(yt, (0, padded - n))
    yp = yp.reshape(total_rows, _LANES)
    yt = yt.reshape(total_rows, _LANES)

    grid = (total_rows // tile_rows,)

    kernel = functools.partial(
        _combined_loss_kernel,
        c_mse=float(alpha),
        c_hub=float((1.0 - alpha) * HUBER_SCALE),
        delta=float(HUBER_DELTA),
        inv_n=1.0 / float(n),
    )

    # TODO(synk): on v7x, add a leading "parallel" grid axis of size 2 with
    # per-core partial outputs (combined in the wrapper) to use both TCs.
    out = pl.pallas_call(
        kernel,
        out_shape=jax.ShapeDtypeStruct((1, 1), jnp.float32),
        grid=grid,
        in_specs=[
            pl.BlockSpec((tile_rows, _LANES), lambda i: (i, 0)),
            pl.BlockSpec((tile_rows, _LANES), lambda i: (i, 0)),
        ],
        out_specs=pl.BlockSpec(memory_space=pltpu.SMEM),
        scratch_shapes=[pltpu.VMEM((tile_rows, _LANES), jnp.float32)],
        compiler_params=pltpu.CompilerParams(
            dimension_semantics=("arbitrary",)),
        cost_estimate=pl.CostEstimate(
            flops=8 * n, transcendentals=0,
            bytes_accessed=2 * n * itemsize + 4),
    )(yp, yt)
    return out[0, 0]


def _reference(y_pred, y_true, alpha=ALPHA):
    d = y_pred.astype(jnp.float32) - y_true.astype(jnp.float32)
    mse = jnp.mean(d * d)
    ad = jnp.abs(d)
    hub = jnp.mean(jnp.where(ad <= HUBER_DELTA, 0.5 * d * d,
                             HUBER_DELTA * (ad - 0.5 * HUBER_DELTA)))
    return alpha * mse + (1.0 - alpha) * hub * HUBER_SCALE


if __name__ == "__main__":
    key = jax.random.PRNGKey(0)
    k1, k2 = jax.random.split(key)
    # Small NCHW-like prediction/target tensors (dense regression output).
    y_pred = jax.random.normal(k1, (2, 4, 16, 16), dtype=jnp.float32) * 2.0
    y_true = jax.random.normal(k2, (2, 4, 16, 16), dtype=jnp.float32)

    loss = combined_loss(y_pred, y_true)
    loss = jax.block_until_ready(loss)

    ref = _reference(y_pred, y_true)
    assert jnp.allclose(loss, ref, rtol=1e-5, atol=1e-5), (loss, ref)
    print("KERNEL_OK")
</pallas_src>

<mosaic_0001>
module attributes {stable_mosaic.version = 11 : i64} {
  func.func @_combined_loss_kernel(%arg0: i32, %arg1: memref<16x128xf32, #tpu.memory_space<vmem>>, %arg2: memref<16x128xf32, #tpu.memory_space<vmem>>, %arg3: memref<1x1xf32, #tpu.memory_space<smem>>, %arg4: memref<16x128xf32, #tpu.memory_space<vmem>>) attributes {dimension_semantics = [#tpu.dimension_semantics<arbitrary>], iteration_bounds = array<i64: 1>, scalar_prefetch = 0 : i64, scratch_operands = 1 : i64, tpu.core_type = #tpu.core_type<tc>, window_params = [{transform_indices = @transform_0, window_bounds = array<i64: 16, 128>}, {transform_indices = @transform_1, window_bounds = array<i64: 16, 128>}, {transform_indices = @transform_2, window_bounds = array<i64: 1, 1>}]} {
    %c0_i32 = arith.constant 0 : i32
    %0 = arith.cmpi eq, %arg0, %c0_i32 : i32
    %1 = arith.extui %0 : i1 to i32
    %c0_i32_0 = arith.constant 0 : i32
    %2 = arith.cmpi ne, %1, %c0_i32_0 : i32
    scf.if %2 {
      %cst_15 = arith.constant 0.000000e+00 : f32
      %28 = vector.broadcast %cst_15 : f32 to vector<16x128xf32>
      %c0_16 = arith.constant 0 : index
      %c0_17 = arith.constant 0 : index
      %29 = vector.load %arg4[%c0_16, %c0_17] : memref<16x128xf32, #tpu.memory_space<vmem>>, vector<16x128xf32>
      tpu.vector_store %arg4[%c0_16, %c0_17], %28 {strides = array<i32>} : memref<16x128xf32, #tpu.memory_space<vmem>>, vector<16x128xf32>,
    } else {
    }
    %c0 = arith.constant 0 : index
    %c0_1 = arith.constant 0 : index
    %3 = vector.load %arg1[%c0, %c0_1] : memref<16x128xf32, #tpu.memory_space<vmem>>, vector<16x128xf32>
    %c0_2 = arith.constant 0 : index
    %c0_3 = arith.constant 0 : index
    %4 = vector.load %arg2[%c0_2, %c0_3] : memref<16x128xf32, #tpu.memory_space<vmem>>, vector<16x128xf32>
    %5 = arith.subf %3, %4 : vector<16x128xf32>
    %6 = arith.mulf %5, %5 : vector<16x128xf32>
    %7 = math.absf %5 : vector<16x128xf32>
    %cst = arith.constant 1.000000e+00 : f32
    %8 = vector.broadcast %cst : f32 to vector<16x128xf32>
    %9 = arith.cmpf ole, %7, %8 : vector<16x128xf32>
    %cst_4 = arith.constant 5.000000e-01 : f32
    %10 = vector.broadcast %cst_4 : f32 to vector<16x128xf32>
    %11 = arith.mulf %10, %6 : vector<16x128xf32>
    %cst_5 = arith.constant 5.000000e-01 : f32
    %12 = vector.broadcast %cst_5 : f32 to vector<16x128xf32>
    %13 = arith.subf %7, %12 : vector<16x128xf32>
    %cst_6 = arith.constant 1.000000e+00 : f32
    %14 = vector.broadcast %cst_6 : f32 to vector<16x128xf32>
    %15 = arith.mulf %14, %13 : vector<16x128xf32>
    %16 = arith.select %9, %11, %15 : vector<16x128xi1>, vector<16x128xf32>
    %c0_7 = arith.constant 0 : index
    %c0_8 = arith.constant 0 : index
    %17 = vector.load %arg4[%c0_7, %c0_8] : memref<16x128xf32, #tpu.memory_space<vmem>>, vector<16x128xf32>
    %cst_9 = arith.constant 5.000000e-01 : f32
    %18 = vector.broadcast %cst_9 : f32 to vector<16x128xf32>
    %19 = arith.mulf %18, %6 : vector<16x128xf32>
    %cst_10 = arith.constant 5.000000e+01 : f32
    %20 = vector.broadcast %cst_10 : f32 to vector<16x128xf32>
    %21 = arith.mulf %20, %16 : vector<16x128xf32>
    %22 = arith.addf %19, %21 : vector<16x128xf32>
    %23 = arith.addf %17, %22 : vector<16x128xf32>
    %c0_11 = arith.constant 0 : index
    %c0_12 = arith.constant 0 : index
    %24 = vector.load %arg4[%c0_11, %c0_12] : memref<16x128xf32, #tpu.memory_space<vmem>>, vector<16x128xf32>
    tpu.vector_store %arg4[%c0_11, %c0_12], %23 {strides = array<i32>} : memref<16x128xf32, #tpu.memory_space<vmem>>, vector<16x128xf32>,
    %c0_i32_13 = arith.constant 0 : i32
    %25 = arith.cmpi eq, %arg0, %c0_i32_13 : i32
    %26 = arith.extui %25 : i1 to i32
    %c0_i32_14 = arith.constant 0 : i32
    %27 = arith.cmpi ne, %26, %c0_i32_14 : i32
    scf.if %27 {
      %c0_15 = arith.constant 0 : index
      %c0_16 = arith.constant 0 : index
      %28 = vector.load %arg4[%c0_15, %c0_16] : memref<16x128xf32, #tpu.memory_space<vmem>>, vector<16x128xf32>
      %29 = vector.shape_cast %28 : vector<16x128xf32> to vector<1x16x128xf32>
      %cst_17 = arith.constant dense<0.000000e+00> : vector<1xf32>
      %30 = vector.multi_reduction <add>, %29, %cst_17 [1, 2] : vector<1x16x128xf32> to vector<1xf32>
      %31 = vector.shape_cast %30 : vector<1xf32> to vector<1x1x1xf32>
      %32 = vector.extract %31[0, 0, 0] : f32 from vector<1x1x1xf32>
      %cst_18 = arith.constant 4.8828125E-4 : f32
      %33 = arith.mulf %32, %cst_18 : f32
      %c0_19 = arith.constant 0 : index
      %c0_20 = arith.constant 0 : index
      %34 = memref.load %arg3[%c0_19, %c0_20] : memref<1x1xf32, #tpu.memory_space<smem>>
      memref.store %33, %arg3[%c0_19, %c0_20] : memref<1x1xf32, #tpu.memory_space<smem>>
    } else {
    }
    return
  }
  func.func @transform_0(%arg0: i32) -> (i32, i32) {
    %c0_i32 = arith.constant 0 : i32
    %c0_i32_0 = arith.constant 0 : i32
    return %arg0, %c0_i32 : i32, i32
  }
  func.func @transform_1(%arg0: i32) -> (i32, i32) {
    %c0_i32 = arith.constant 0 : i32
    %c0_i32_0 = arith.constant 0 : i32
    return %arg0, %c0_i32 : i32, i32
  }
  func.func @transform_2(%arg0: i32) -> (i32, i32) {
    %c0_i32 = arith.constant 0 : i32
    %c0_i32_0 = arith.constant 0 : i32
    %c0_i32_1 = arith.constant 0 : i32
    return %c0_i32, %c0_i32_0 : i32, i32
  }
}

</mosaic_0001>

<bundles_post_ra>
// kernel: tpu_custom_call.1
= control target key start
LH: loop header
LB: loop body
LE: loop exit
PB: predicated region body
PF: predicated region fallthrough
CT: control target
= control target key end

     0   :  { %7 = vsyncpa [#allocation4], 0  ;;  %s199_s0 = inlined_call_operand.hbm [shape: f32[16,128], index: 0, kind: input, shape index: {}]   ;;  %s200_s1 = inlined_call_operand.hbm [shape: f32[16,128], index: 1, kind: input, shape index: {}]   ;;  %s201_s2 = inlined_call_operand.hbm [shape: f32[1,1], index: 2, kind: output, shape index: {}]  }
   0x1   :  { %8 = vsyncpa [#allocation7], 0 }
   0x2   :  { %9 = vsyncpa [#allocation5], 0  ;;  %s170_s9 = smov [#allocation3]  }
   0x3   :  { %s15_s10 = sshll.u32 %s170_s9, 4  ;;  %s16_s10 = int_to_ptr.vmem [resolvable:$true] %s15_s10 }
   0x4   :  { %s124_s11 = scalar_lea.vmem %s16_s10, 256  ;;  %p129_p1 = scmp.lt.s32.totalorder %s16_s10, %s16_s10 }
   0x5   :  { %p125_p0 = scmp.ne.s32.totalorder %s16_s10, %s124_s11  ;;  %p130_p2 = scmp.lt.s32.totalorder %s124_s11, %s124_s11 }
   0x7   :  { %p131_p3 = por %p130_p2, %p129_p1 }
   0x9   :  { %p132_p4 = pnand %p131_p3, %p125_p0 }
   0xb   :  { %135 = shalt.err (!%p132_p4)
}
   0xc   :  { %s171_s12 = smov 128   ;;  %s172_s13 = smov 8  }
   0xd   :  { %21 = dma.hbm_to_vmem [thread:$0]  %s199_s0, 256, %s16_s10, [#allocation4], %s171_s12, %s171_s12, %s172_s13  }
   0xe   :  { %s173_s16 = smov [#allocation6]  }
   0xf   :  { %s27_s17 = sshll.u32 %s173_s16, 4  ;;  %s28_s17 = int_to_ptr.vmem [resolvable:$true] %s27_s17 }
  0x10   :  { %s144_s18 = scalar_lea.vmem %s28_s17, 256  ;;  %p149_p6 = scmp.lt.s32.totalorder %s28_s17, %s28_s17 }
  0x11   :  { %p145_p5 = scmp.ne.s32.totalorder %s28_s17, %s144_s18  ;;  %p150_p7 = scmp.lt.s32.totalorder %s144_s18, %s144_s18 }
  0x13   :  { %p151_p8 = por %p150_p7, %p149_p6 }
  0x15   :  { %p152_p9 = pnand %p151_p8, %p145_p5 }
  0x17   :  { %155 = shalt.err (!%p152_p9)
}
  0x18   :  { %33 = dma.hbm_to_vmem [thread:$0]  %s200_s1, 256, %s28_s17, [#allocation7], %s171_s12, %s171_s12, %s172_s13  }
  0x19   :  { %164 = dma.done.wait [#allocation4], 256  }
  0x1a   :  { %165 = vsyncadd [#allocation4], 4294967040 }
  0x1b   :  { %166 = dma.done.wait [#allocation7], 256  }
  0x1c   :  { %167 = vsyncadd [#allocation7], 4294967040  ;;  %v46_v0 = vld [vmem:[#allocation3] sm:$0xff]  ;;  %v47_v1 = vld [vmem:[#allocation3 + $0x8] sm:$0xff]  ;;  %s174_s21 = smov [#allocation8]  }
  0x1d   :  { %v48_v2 = vld [vmem:[#allocation6] sm:$0xff]  ;;  %v49_v3 = vld [vmem:[#allocation6 + $0x8] sm:$0xff] }
  0x1e   :  { %v50_v4 = vsub.f32 %v46_v0, %v48_v2  ;;  %v51_v5 = vsub.f32 %v47_v1, %v49_v3 }
  0x20   :  { %v52_v6 = vmul.f32 %v50_v4, %v50_v4  ;;  %v54_v7 = vand.u32 2147483647, %v50_v4  ;;  %v53_v8 = vmul.f32 %v51_v5, %v51_v5  ;;  %v55_v9 = vand.u32 2147483647, %v51_v5 }
  0x22   :  { %vm56_vm0 = vcmp.le.f32.partialorder %v54_v7, 1.0  ;;  %v58_v10 = vmul.f32 0.5, %v52_v6  ;;  %v107_v11 = vadd.f32 -0.5, %v54_v7  ;;  %vm57_vm1 = vcmp.le.f32.partialorder %v55_v9, 1.0 }
  0x23   :  { %v59_v12 = vmul.f32 0.5, %v53_v8  ;;  %v108_v13 = vadd.f32 -0.5, %v55_v9 }
  0x24   :  { %v62_v14 = vsel %vm56_vm0, %v58_v10, %v107_v11 }
  0x25   :  { %v63_v15 = vsel %vm57_vm1, %v59_v12, %v108_v13  ;;  %v66_v16 = vmul.f32 50.0, %v62_v14 }
  0x26   :  { %v67_v17 = vmul.f32 50.0, %v63_v15 }
  0x27   :  { %v68_v18 = vadd.f32 %v66_v16, %v58_v10 }
  0x28   :  { %v69_v19 = vadd.f32 %v67_v17, %v59_v12 }
  0x2a   :  { %v79_v20 = vadd.f32 %v69_v19, %v68_v18 }
  0x2c   :  { %80 = vadd.xlane.f32.xlu0 %v79_v20 }
  0xb5   :  { %v81_v21 = vpop.xlane.xlu0 %80 }
  0xb6   :  { %v82_v22 = vrot.slane %v81_v21, 4 }
  0xb8   :  { %v83_v23 = vadd.f32 %v82_v22, %v81_v21 }
  0xba   :  { %v84_v24 = vrot.slane %v83_v23, 2 }
  0xbc   :  { %v85_v25 = vadd.f32 %v84_v24, %v83_v23 }
  0xbe   :  { %v86_v26 = vrot.slane %v85_v25, 1 }
  0xc0   :  { %v87_v27 = vadd.f32 %v86_v26, %v85_v25 }
  0xc2   :  { %109 = vpush %v87_v27 }
  0xf3   :  { %s110_s0 = spop %109 }
  0xf4   :  { %s89_s1 = smul.f32 0.00048828125, %s110_s0 }
  0xf6   :  { %91 = sst [smem:[#allocation8]] %s89_s1 }
  0xf7   :  { %99 = dma.smem_to_hbm %s174_s21, 16, %s201_s2, [#allocation5]  }
  0xf8   :  { %168 = dma.done.wait [#allocation5], 16  }
  0xf9   :  { %169 = vsyncadd [#allocation5], 4294967280 }
  0xfa   :  { %103 = sfence }
  0xfb   :  { %104 = vsyncpa [#allocation4], 1 }
  0xfc   :  { %105 = vsyncpa [#allocation7], 1 }
  0xfd   :  { %106 = vsyncpa [#allocation5], 1 }

</bundles_post_ra>
